<compile_context>
chip_gen: v6e
topology: v6e:2x2x1
jax: 0.10.0
libtpu: 0.0.40
codegen_flags: <defaults>
</compile_context>

<pallas_src>
import functools

import jax
import jax.numpy as jnp
from jax.experimental import pallas as pl
from jax.experimental.pallas import tpu as pltpu


def _round_up(x, m):
    return (x + m - 1) // m * m


# ----------------------------------------------------------------------------
# Kernel 1: tiled matmul + bias (+ optional fused log-softmax over last dim).
# bf16 operands -> f32 MXU accumulation; bias add and log-softmax stay in f32.
# Tiled over M (rows) with a "parallel" grid; weights/bias are broadcast blocks.
# ----------------------------------------------------------------------------
def _matmul_bias_kernel(a_ref, w_ref, b_ref, o_ref, *, logsoftmax):
    z = (
        jnp.dot(a_ref[...], w_ref[...], preferred_element_type=jnp.float32)
        + b_ref[...]
    )
    if logsoftmax:
        m = jnp.max(z, axis=-1, keepdims=True)
        z = z - m
        lse = jnp.log(jnp.sum(jnp.exp(z), axis=-1, keepdims=True))
        z = z - lse
    o_ref[...] = z.astype(o_ref.dtype)


def tiled_matmul_bias(a, w, b, *, logsoftmax=False, tm=1024):
    # a: (M, K) bf16, w: (K, N) bf16, b: (1, N) f32 -> (M, N) f32
    M, K = a.shape
    N = w.shape[1]
    tm = min(tm, _round_up(M, 8))          # row tile (multiple of 8 sublanes)
    Mp = _round_up(M, tm)
    if Mp != M:
        a = jnp.pad(a, ((0, Mp - M), (0, 0)))
    out = pl.pallas_call(
        functools.partial(_matmul_bias_kernel, logsoftmax=logsoftmax),
        out_shape=jax.ShapeDtypeStruct((Mp, N), jnp.float32),
        grid_spec=pltpu.PrefetchScalarGridSpec(
            num_scalar_prefetch=0,
            grid=(Mp // tm,),
            in_specs=[
                pl.BlockSpec((tm, K), lambda i: (i, 0)),
                pl.BlockSpec((K, N), lambda i: (0, 0)),
                pl.BlockSpec((1, N), lambda i: (0, 0)),
            ],
            out_specs=pl.BlockSpec((tm, N), lambda i: (i, 0)),
        ),
        compiler_params=pltpu.CompilerParams(
            dimension_semantics=("parallel",),
            vmem_limit_bytes=64 * 1024 * 1024,
        ),
    )(a, w, b)
    return out[:M] if Mp != M else out


# ----------------------------------------------------------------------------
# Kernel 2: fused bidirectional LSTM with the (conv-folded) input projection
# computed in-kernel.  grid = (direction, time).  Per step we stream only the
# (N, 3*Cin) im2col slab; weights/biases are full-array VMEM-resident blocks.
# Gate order matches PyTorch: i, f, g, o.  Hidden states are written directly
# into the concatenated (S, N, 2H) bf16 output (d selects the H-wide column).
# ----------------------------------------------------------------------------
def _bilstm_kernel(cols_ref, wx_ref, wh_ref, b_ref, o_ref, h_scr, c_scr):
    d = pl.program_id(0)

    @pl.when(pl.program_id(1) == 0)
    def _():
        h_scr[d] = jnp.zeros(h_scr.shape[1:], h_scr.dtype)
        c_scr[d] = jnp.zeros(c_scr.shape[1:], c_scr.dtype)

    H = wh_ref.shape[1]
    # Fused input projection + recurrence: bf16 MXU operands, f32 accumulation,
    # f32 bias add.  H is a multiple of 128, so gate slices are lane-aligned.
    gates = (
        jnp.dot(cols_ref[0], wx_ref[d], preferred_element_type=jnp.float32)
        + jnp.dot(h_scr[d], wh_ref[d], preferred_element_type=jnp.float32)
        + b_ref[d]
    )  # (N, 4H) f32

    g16 = gates.astype(jnp.bfloat16)            # bf16 EUP path on v6e/v7x
    i_g = jax.nn.sigmoid(g16[:, 0 * H:1 * H])
    f_g = jax.nn.sigmoid(g16[:, 1 * H:2 * H])
    g_g = jnp.tanh(g16[:, 2 * H:3 * H])
    o_g = jax.nn.sigmoid(g16[:, 3 * H:4 * H])

    c_new = f_g * c_scr[d] + i_g * g_g          # cell-state math kept in f32
    h_new = o_g * jnp.tanh(c_new.astype(jnp.bfloat16))   # bf16 hidden state
    c_scr[d] = c_new
    h_scr[d] = h_new
    o_ref[0] = h_new


def bilstm(cols, w_x, w_h, b, *, hidden):
    # cols: (S, N, 3*Cin) bf16 im2col of the conv input; the LSTM scans axis 0.
    # w_x:  (2, 3*Cin, 4H) bf16 conv-folded input-projection weights per direction
    # w_h:  (2, H, 4H)     bf16 recurrent weights per direction
    # b:    (2, 1, 4H)     f32 folded biases per direction
    S, N, C3 = cols.shape
    H = hidden

    def t_orig(d, t):
        # d=0 -> forward scan; d=1 -> reverse scan, written back in original order.
        return (1 - d) * t + d * (S - 1 - t)

    return pl.pallas_call(
        _bilstm_kernel,
        out_shape=jax.ShapeDtypeStruct((S, N, 2 * H), jnp.bfloat16),
        grid_spec=pltpu.PrefetchScalarGridSpec(
            num_scalar_prefetch=0,
            grid=(2, S),
            in_specs=[
                pl.BlockSpec((1, N, C3), lambda d, t: (t_orig(d, t), 0, 0)),
                pl.BlockSpec((2, C3, 4 * H), lambda d, t: (0, 0, 0)),  # resident
                pl.BlockSpec((2, H, 4 * H), lambda d, t: (0, 0, 0)),   # resident
                pl.BlockSpec((2, 1, 4 * H), lambda d, t: (0, 0, 0)),   # resident
            ],
            out_specs=pl.BlockSpec((1, N, H), lambda d, t: (t_orig(d, t), 0, d)),
            scratch_shapes=[
                pltpu.VMEM((2, N, H), jnp.bfloat16),   # h, per direction
                pltpu.VMEM((2, N, H), jnp.float32),    # c, per direction (f32)
            ],
        ),
        # Direction axis is independent (per-direction state slabs): "parallel".
        # Time axis is a true recurrence -> "arbitrary".
        compiler_params=pltpu.CompilerParams(
            dimension_semantics=("parallel", "arbitrary"),
            vmem_limit_bytes=64 * 1024 * 1024,
        ),
    )(cols, w_x, w_h, b)


# ----------------------------------------------------------------------------
# Full forward pass (lx=None path of the PyTorch module)
# ----------------------------------------------------------------------------
def network_forward(x, params):
    B, T, Cin = x.shape
    H = params["conv_w"].shape[0]
    OUT = params["fc_w"].shape[0]
    assert H % 128 == 0, "hidden_size must be a multiple of 128 (lane alignment)"

    # --- Conv1d(Cin->H, k=3, pad=1) as im2col; weights folded into the LSTM
    #     input projection so only (N, 3*Cin) is streamed per recurrence step ---
    # T (acting as the LSTM "batch") is padded to a multiple of 8 sublanes; the
    # extra rows are independent and sliced off after the LSTM.
    Tp = _round_up(T, 8)
    xp = jnp.pad(x, ((0, 0), (1, 1 + Tp - T), (0, 0)))                 # (B, Tp+2, Cin)
    cols = jnp.stack([xp[:, k:k + Tp, :] for k in range(3)], axis=2)   # (B, Tp, 3, Cin)
    cols = cols.reshape(B, Tp, 3 * Cin).astype(jnp.bfloat16)

    # conv_w: (H, Cin, 3) -> (3*Cin, H) so flat (k, c) indexing matches im2col.
    # All weight folding is done in f32, then cast to bf16 for the MXU.
    w2 = jnp.transpose(params["conv_w"], (2, 1, 0)).reshape(3 * Cin, H)
    wih_f = params["lstm_w_ih_f"].T                                    # (H, 4H)
    wih_r = params["lstm_w_ih_r"].T
    w_x = jnp.stack([w2 @ wih_f, w2 @ wih_r]).astype(jnp.bfloat16)     # (2, 3Cin, 4H)
    w_h = jnp.stack(
        [params["lstm_w_hh_f"].T, params["lstm_w_hh_r"].T]
    ).astype(jnp.bfloat16)                                             # (2, H, 4H)
    b = jnp.stack([
        params["conv_b"] @ wih_f + params["lstm_b_ih_f"] + params["lstm_b_hh_f"],
        params["conv_b"] @ wih_r + params["lstm_b_ih_r"] + params["lstm_b_hh_r"],
    ]).reshape(2, 1, 4 * H)                                            # f32

    # --- Fused bidirectional LSTM (scan over axis 0: batch_first=False quirk) ---
    lstm_out = bilstm(cols, w_x, w_h, b, hidden=H)[:, :T, :]           # (B, T, 2H) bf16

    # --- Linear(2H -> OUT) + LogSoftmax, padded to a lane-dense 128-wide stripe ---
    OUT_pad = _round_up(OUT, 128)
    w_pad = (
        jnp.zeros((2 * H, OUT_pad), jnp.float32)
        .at[:, :OUT].set(params["fc_w"].T)
        .astype(jnp.bfloat16)
    )
    # -1e30 bias (kept in f32!) on padded columns -> exp() underflows to 0, so
    # the log-softmax over the padded stripe equals the one over the real OUT cols.
    b_pad = (
        jnp.full((1, OUT_pad), -1e30, jnp.float32).at[0, :OUT].set(params["fc_b"])
    )
    flat = lstm_out.reshape(B * T, 2 * H)
    log_probs = tiled_matmul_bias(flat, w_pad, b_pad, logsoftmax=True)[:, :OUT]
    return log_probs.reshape(B, T, OUT)


# ----------------------------------------------------------------------------
# Pure-JAX f32 reference (mirrors the PyTorch module's lx=None semantics) for a
# correctness check in the demo.
# ----------------------------------------------------------------------------
def network_forward_ref(x, params):
    B, T, Cin = x.shape
    H = params["conv_w"].shape[0]
    xp = jnp.pad(x, ((0, 0), (1, 1), (0, 0)))
    cols = jnp.stack([xp[:, k:k + T, :] for k in range(3)], axis=2)
    a = cols.reshape(B * T, 3 * Cin)
    w2 = jnp.transpose(params["conv_w"], (2, 1, 0)).reshape(3 * Cin, H)
    emb = (a @ w2 + params["conv_b"]).reshape(B, T, H)

    def run_dir(x_seq, w_ih, w_hh, b_ih, b_hh):
        def step(carry, x_t):
            h, c = carry
            g = x_t @ w_ih.T + b_ih + h @ w_hh.T + b_hh
            i = jax.nn.sigmoid(g[:, 0 * H:1 * H])
            f = jax.nn.sigmoid(g[:, 1 * H:2 * H])
            gg = jnp.tanh(g[:, 2 * H:3 * H])
            o = jax.nn.sigmoid(g[:, 3 * H:4 * H])
            c = f * c + i * gg
            h = o * jnp.tanh(c)
            return (h, c), h

        h0 = jnp.zeros((x_seq.shape[1], H), jnp.float32)
        _, hs = jax.lax.scan(step, (h0, jnp.zeros_like(h0)), x_seq)
        return hs

    h_f = run_dir(emb, params["lstm_w_ih_f"], params["lstm_w_hh_f"],
                  params["lstm_b_ih_f"], params["lstm_b_hh_f"])
    h_r = run_dir(emb[::-1], params["lstm_w_ih_r"], params["lstm_w_hh_r"],
                  params["lstm_b_ih_r"], params["lstm_b_hh_r"])[::-1]
    lstm_out = jnp.concatenate([h_f, h_r], axis=-1)
    logits = lstm_out.reshape(B * T, 2 * H) @ params["fc_w"].T + params["fc_b"]
    return jax.nn.log_softmax(logits, axis=-1).reshape(B, T, -1)


def init_params(key, input_size, hidden_size, output_size):
    H, Cin, OUT = hidden_size, input_size, output_size
    ks = jax.random.split(key, 12)
    u = lambda k, shape, scale: jax.random.uniform(
        k, shape, jnp.float32, minval=-scale, maxval=scale
    )
    sc_conv = 1.0 / jnp.sqrt(Cin * 3.0)
    sc_lstm = 1.0 / jnp.sqrt(float(H))
    sc_fc = 1.0 / jnp.sqrt(2.0 * H)
    return {
        "conv_w": u(ks[0], (H, Cin, 3), sc_conv),
        "conv_b": u(ks[1], (H,), sc_conv),
        "lstm_w_ih_f": u(ks[2], (4 * H, H), sc_lstm),
        "lstm_w_hh_f": u(ks[3], (4 * H, H), sc_lstm),
        "lstm_b_ih_f": u(ks[4], (4 * H,), sc_lstm),
        "lstm_b_hh_f": u(ks[5], (4 * H,), sc_lstm),
        "lstm_w_ih_r": u(ks[6], (4 * H, H), sc_lstm),
        "lstm_w_hh_r": u(ks[7], (4 * H, H), sc_lstm),
        "lstm_b_ih_r": u(ks[8], (4 * H,), sc_lstm),
        "lstm_b_hh_r": u(ks[9], (4 * H,), sc_lstm),
        "fc_w": u(ks[10], (OUT, 2 * H), sc_fc),
        "fc_b": u(ks[11], (OUT,), sc_fc),
    }


if __name__ == "__main__":
    # Small shapes consistent with the module's forward signature.
    # HIDDEN=128 (not 32) so gate slices / h-stores stay 128-lane aligned.
    B, T, INPUT, HIDDEN, OUTPUT = 4, 8, 16, 128, 10

    key = jax.random.PRNGKey(0)
    k_x, k_p = jax.random.split(key)
    x = jax.random.normal(k_x, (B, T, INPUT), dtype=jnp.float32)
    params = init_params(k_p, INPUT, HIDDEN, OUTPUT)

    fwd = jax.jit(functools.partial(network_forward, params=params))
    log_probs = jax.block_until_ready(fwd(x))

    assert log_probs.shape == (B, T, OUTPUT)
    assert bool(jnp.all(jnp.isfinite(log_probs)))
    # log-softmax sanity: probabilities along last dim sum to 1 (computed in f32).
    sums = jnp.sum(jnp.exp(log_probs), axis=-1)
    assert bool(jnp.allclose(sums, 1.0, atol=1e-4))
    # correctness vs. a pure-JAX f32 reference; bf16 matmuls/activations -> looser tol.
    ref = network_forward_ref(x, params)
    assert bool(jnp.max(jnp.abs(log_probs - ref)) < 1e-1)

    print("KERNEL_OK")
</pallas_src>

<mosaic_0001>
module attributes {stable_mosaic.version = 11 : i64} {
  func.func @_matmul_bias_kernel(%arg0: i32, %arg1: memref<32x256xbf16, #tpu.memory_space<vmem>>, %arg2: memref<256x128xbf16, #tpu.memory_space<vmem>>, %arg3: memref<1x128xf32, #tpu.memory_space<vmem>>, %arg4: memref<32x128xf32, #tpu.memory_space<vmem>>) attributes {dimension_semantics = [#tpu.dimension_semantics<parallel>], iteration_bounds = array<i64: 1>, scalar_prefetch = 0 : i64, scratch_operands = 0 : i64, tpu.core_type = #tpu.core_type<tc>, window_params = [{transform_indices = @transform_0, window_bounds = array<i64: 32, 256>}, {pipeline_mode = #tpu.pipeline_mode<synchronous>, transform_indices = @transform_1, window_bounds = array<i64: 256, 128>}, {pipeline_mode = #tpu.pipeline_mode<synchronous>, transform_indices = @transform_2, window_bounds = array<i64: 1, 128>}, {transform_indices = @transform_3, window_bounds = array<i64: 32, 128>}]} {
    %c0 = arith.constant 0 : index
    %c0_0 = arith.constant 0 : index
    %0 = vector.load %arg1[%c0, %c0_0] : memref<32x256xbf16, #tpu.memory_space<vmem>>, vector<32x256xbf16>
    %c0_1 = arith.constant 0 : index
    %c0_2 = arith.constant 0 : index
    %1 = vector.load %arg2[%c0_1, %c0_2] : memref<256x128xbf16, #tpu.memory_space<vmem>>, vector<256x128xbf16>
    %cst = arith.constant dense<0.000000e+00> : vector<32x128xf32>
    %2 = tpu.matmul %0, %1, %cst {dimension_numbers = #tpu.dot_dimension_numbers<[1], [0], [0], [1], [0, 0, 1, 1], [], []>} : vector<32x256xbf16>, vector<256x128xbf16>, vector<32x128xf32> -> vector<32x128xf32>
    %c0_3 = arith.constant 0 : index
    %c0_4 = arith.constant 0 : index
    %3 = vector.load %arg3[%c0_3, %c0_4] : memref<1x128xf32, #tpu.memory_space<vmem>>, vector<1x128xf32>
    %4 = vector.broadcast %3 : vector<1x128xf32> to vector<32x128xf32>
    %5 = arith.addf %2, %4 : vector<32x128xf32>
    %cst_5 = arith.constant dense<0xFF800000> : vector<32xf32>
    %6 = vector.multi_reduction <maximumf>, %5, %cst_5 [1] : vector<32x128xf32> to vector<32xf32>
    %7 = vector.shape_cast %6 : vector<32xf32> to vector<32x1xf32>
    %8 = vector.broadcast %7 : vector<32x1xf32> to vector<32x128xf32>
    %9 = arith.subf %5, %8 : vector<32x128xf32>
    %10 = math.exp %9 : vector<32x128xf32>
    %cst_6 = arith.constant dense<0.000000e+00> : vector<32xf32>
    %11 = vector.multi_reduction <add>, %10, %cst_6 [1] : vector<32x128xf32> to vector<32xf32>
    %12 = vector.shape_cast %11 : vector<32xf32> to vector<32x1xf32>
    %13 = math.log %12 : vector<32x1xf32>
    %14 = vector.broadcast %13 : vector<32x1xf32> to vector<32x128xf32>
    %15 = arith.subf %9, %14 : vector<32x128xf32>
    %c0_7 = arith.constant 0 : index
    %c0_8 = arith.constant 0 : index
    %16 = vector.load %arg4[%c0_7, %c0_8] : memref<32x128xf32, #tpu.memory_space<vmem>>, vector<32x128xf32>
    tpu.vector_store %arg4[%c0_7, %c0_8], %15 {strides = array<i32>} : memref<32x128xf32, #tpu.memory_space<vmem>>, vector<32x128xf32>,
    return
  }
  func.func @transform_0(%arg0: i32) -> (i32, i32) {
    %c0_i32 = arith.constant 0 : i32
    %c0_i32_0 = arith.constant 0 : i32
    return %arg0, %c0_i32 : i32, i32
  }
  func.func @transform_1(%arg0: i32) -> (i32, i32) {
    %c0_i32 = arith.constant 0 : i32
    %c0_i32_0 = arith.constant 0 : i32
    %c0_i32_1 = arith.constant 0 : i32
    return %c0_i32, %c0_i32_0 : i32, i32
  }
  func.func @transform_2(%arg0: i32) -> (i32, i32) {
    %c0_i32 = arith.constant 0 : i32
    %c0_i32_0 = arith.constant 0 : i32
    %c0_i32_1 = arith.constant 0 : i32
    return %c0_i32, %c0_i32_0 : i32, i32
  }
  func.func @transform_3(%arg0: i32) -> (i32, i32) {
    %c0_i32 = arith.constant 0 : i32
    %c0_i32_0 = arith.constant 0 : i32
    return %arg0, %c0_i32 : i32, i32
  }
}

module attributes {stable_mosaic.version = 11 : i64} {
  func.func @_bilstm_kernel(%arg0: i32, %arg1: i32, %arg2: memref<1x8x48xbf16, #tpu.memory_space<vmem>>, %arg3: memref<2x48x512xbf16, #tpu.memory_space<vmem>>, %arg4: memref<2x128x512xbf16, #tpu.memory_space<vmem>>, %arg5: memref<2x1x512xf32, #tpu.memory_space<vmem>>, %arg6: memref<1x8x128xbf16, #tpu.memory_space<vmem>>, %arg7: memref<2x8x128xbf16, #tpu.memory_space<vmem>>, %arg8: memref<2x8x128xf32, #tpu.memory_space<vmem>>) attributes {dimension_semantics = [#tpu.dimension_semantics<parallel>, #tpu.dimension_semantics<arbitrary>], iteration_bounds = array<i64: 2, 4>, scalar_prefetch = 0 : i64, scratch_operands = 2 : i64, tpu.core_type = #tpu.core_type<tc>, window_params = [{transform_indices = @transform_0, window_bounds = array<i64: 1, 8, 48>}, {pipeline_mode = #tpu.pipeline_mode<synchronous>, transform_indices = @transform_1, window_bounds = array<i64: 2, 48, 512>}, {pipeline_mode = #tpu.pipeline_mode<synchronous>, transform_indices = @transform_2, window_bounds = array<i64: 2, 128, 512>}, {pipeline_mode = #tpu.pipeline_mode<synchronous>, transform_indices = @transform_3, window_bounds = array<i64: 2, 1, 512>}, {transform_indices = @transform_4, window_bounds = array<i64: 1, 8, 128>}]} {
    %c0_i32 = arith.constant 0 : i32
    %0 = arith.cmpi eq, %arg1, %c0_i32 : i32
    %1 = arith.extui %0 : i1 to i32
    %c0_i32_0 = arith.constant 0 : i32
    %2 = arith.cmpi ne, %1, %c0_i32_0 : i32
    scf.if %2 {
      %cst_24 = arith.constant 0.000000e+00 : bf16
      %65 = vector.broadcast %cst_24 : bf16 to vector<8x128xbf16>
      %66 = arith.index_cast %arg0 : i32 to index
      %c0_25 = arith.constant 0 : index
      %c0_26 = arith.constant 0 : index
      %67 = vector.load %arg7[%66, %c0_25, %c0_26] : memref<2x8x128xbf16, #tpu.memory_space<vmem>>, vector<1x8x128xbf16>
      %68 = vector.shape_cast %67 : vector<1x8x128xbf16> to vector<8x128xbf16>
      %69 = vector.shape_cast %65 : vector<8x128xbf16> to vector<1x8x128xbf16>
      tpu.vector_store %arg7[%66, %c0_25, %c0_26], %69 {strides = array<i32>} : memref<2x8x128xbf16, #tpu.memory_space<vmem>>, vector<1x8x128xbf16>,
      %cst_27 = arith.constant 0.000000e+00 : f32
      %70 = vector.broadcast %cst_27 : f32 to vector<8x128xf32>
      %71 = arith.index_cast %arg0 : i32 to index
      %c0_28 = arith.constant 0 : index
      %c0_29 = arith.constant 0 : index
      %72 = vector.load %arg8[%71, %c0_28, %c0_29] : memref<2x8x128xf32, #tpu.memory_space<vmem>>, vector<1x8x128xf32>
      %73 = vector.shape_cast %72 : vector<1x8x128xf32> to vector<8x128xf32>
      %74 = vector.shape_cast %70 : vector<8x128xf32> to vector<1x8x128xf32>
      tpu.vector_store %arg8[%71, %c0_28, %c0_29], %74 {strides = array<i32>} : memref<2x8x128xf32, #tpu.memory_space<vmem>>, vector<1x8x128xf32>,
    } else {
    }
    %c0 = arith.constant 0 : index
    %c0_1 = arith.constant 0 : index
    %c0_2 = arith.constant 0 : index
    %3 = vector.load %arg2[%c0, %c0_1, %c0_2] : memref<1x8x48xbf16, #tpu.memory_space<vmem>>, vector<1x8x48xbf16>
    %4 = vector.shape_cast %3 : vector<1x8x48xbf16> to vector<8x48xbf16>
    %5 = arith.index_cast %arg0 : i32 to index
    %c0_3 = arith.constant 0 : index
    %c0_4 = arith.constant 0 : index
    %6 = vector.load %arg3[%5, %c0_3, %c0_4] : memref<2x48x512xbf16, #tpu.memory_space<vmem>>, vector<1x48x512xbf16>
    %7 = vector.shape_cast %6 : vector<1x48x512xbf16> to vector<48x512xbf16>
    %cst = arith.constant dense<0.000000e+00> : vector<8x512xf32>
    %8 = tpu.matmul %4, %7, %cst {dimension_numbers = #tpu.dot_dimension_numbers<[1], [0], [0], [1], [0, 0, 1, 1], [], []>} : vector<8x48xbf16>, vector<48x512xbf16>, vector<8x512xf32> -> vector<8x512xf32>
    %9 = arith.index_cast %arg0 : i32 to index
    %c0_5 = arith.constant 0 : index
    %c0_6 = arith.constant 0 : index
    %10 = vector.load %arg7[%9, %c0_5, %c0_6] : memref<2x8x128xbf16, #tpu.memory_space<vmem>>, vector<1x8x128xbf16>
    %11 = vector.shape_cast %10 : vector<1x8x128xbf16> to vector<8x128xbf16>
    %12 = arith.index_cast %arg0 : i32 to index
    %c0_7 = arith.constant 0 : index
    %c0_8 = arith.constant 0 : index
    %13 = vector.load %arg4[%12, %c0_7, %c0_8] : memref<2x128x512xbf16, #tpu.memory_space<vmem>>, vector<1x128x512xbf16>
    %14 = vector.shape_cast %13 : vector<1x128x512xbf16> to vector<128x512xbf16>
    %cst_9 = arith.constant dense<0.000000e+00> : vector<8x512xf32>
    %15 = tpu.matmul %11, %14, %cst_9 {dimension_numbers = #tpu.dot_dimension_numbers<[1], [0], [0], [1], [0, 0, 1, 1], [], []>} : vector<8x128xbf16>, vector<128x512xbf16>, vector<8x512xf32> -> vector<8x512xf32>
    %16 = arith.addf %8, %15 : vector<8x512xf32>
    %17 = arith.index_cast %arg0 : i32 to index
    %c0_10 = arith.constant 0 : index
    %c0_11 = arith.constant 0 : index
    %18 = vector.load %arg5[%17, %c0_10, %c0_11] : memref<2x1x512xf32, #tpu.memory_space<vmem>>, vector<1x1x512xf32>
    %19 = vector.shape_cast %18 : vector<1x1x512xf32> to vector<1x512xf32>
    %20 = vector.broadcast %19 : vector<1x512xf32> to vector<8x512xf32>
    %21 = arith.addf %16, %20 : vector<8x512xf32>
    %22 = arith.truncf %21 : vector<8x512xf32> to vector<8x512xbf16>
    %23 = vector.extract_strided_slice %22 {offsets = [0, 0], sizes = [8, 128], strides = [1, 1]} : vector<8x512xbf16> to vector<8x128xbf16>
    %24 = arith.negf %23 : vector<8x128xbf16>
    %25 = math.exp %24 : vector<8x128xbf16>
    %cst_12 = arith.constant 1.000000e+00 : bf16
    %26 = vector.broadcast %cst_12 : bf16 to vector<8x128xbf16>
    %27 = arith.addf %26, %25 : vector<8x128xbf16>
    %28 = arith.divf %26, %27 : vector<8x128xbf16>
    %29 = vector.extract_strided_slice %22 {offsets = [0, 128], sizes = [8, 128], strides = [1, 1]} : vector<8x512xbf16> to vector<8x128xbf16>
    %30 = arith.negf %29 : vector<8x128xbf16>
    %31 = math.exp %30 : vector<8x128xbf16>
    %cst_13 = arith.constant 1.000000e+00 : bf16
    %32 = vector.broadcast %cst_13 : bf16 to vector<8x128xbf16>
    %33 = arith.addf %32, %31 : vector<8x128xbf16>
    %34 = arith.divf %32, %33 : vector<8x128xbf16>
    %35 = vector.extract_strided_slice %22 {offsets = [0, 256], sizes = [8, 128], strides = [1, 1]} : vector<8x512xbf16> to vector<8x128xbf16>
    %36 = math.tanh %35 : vector<8x128xbf16>
    %37 = vector.extract_strided_slice %22 {offsets = [0, 384], sizes = [8, 128], strides = [1, 1]} : vector<8x512xbf16> to vector<8x128xbf16>
    %38 = arith.negf %37 : vector<8x128xbf16>
    %39 = math.exp %38 : vector<8x128xbf16>
    %cst_14 = arith.constant 1.000000e+00 : bf16
    %40 = vector.broadcast %cst_14 : bf16 to vector<8x128xbf16>
    %41 = arith.addf %40, %39 : vector<8x128xbf16>
    %42 = arith.divf %40, %41 : vector<8x128xbf16>
    %43 = arith.index_cast %arg0 : i32 to index
    %c0_15 = arith.constant 0 : index
    %c0_16 = arith.constant 0 : index
    %44 = vector.load %arg8[%43, %c0_15, %c0_16] : memref<2x8x128xf32, #tpu.memory_space<vmem>>, vector<1x8x128xf32>
    %45 = vector.shape_cast %44 : vector<1x8x128xf32> to vector<8x128xf32>
    %46 = arith.extf %34 : vector<8x128xbf16> to vector<8x128xf32>
    %47 = arith.mulf %46, %45 : vector<8x128xf32>
    %48 = arith.mulf %28, %36 : vector<8x128xbf16>
    %49 = arith.extf %48 : vector<8x128xbf16> to vector<8x128xf32>
    %50 = arith.addf %47, %49 : vector<8x128xf32>
    %51 = arith.truncf %50 : vector<8x128xf32> to vector<8x128xbf16>
    %52 = math.tanh %51 : vector<8x128xbf16>
    %53 = arith.mulf %42, %52 : vector<8x128xbf16>
    %54 = arith.index_cast %arg0 : i32 to index
    %c0_17 = arith.constant 0 : index
    %c0_18 = arith.constant 0 : index
    %55 = vector.load %arg8[%54, %c0_17, %c0_18] : memref<2x8x128xf32, #tpu.memory_space<vmem>>, vector<1x8x128xf32>
    %56 = vector.shape_cast %55 : vector<1x8x128xf32> to vector<8x128xf32>
    %57 = vector.shape_cast %50 : vector<8x128xf32> to vector<1x8x128xf32>
    tpu.vector_store %arg8[%54, %c0_17, %c0_18], %57 {strides = array<i32>} : memref<2x8x128xf32, #tpu.memory_space<vmem>>, vector<1x8x128xf32>,
    %58 = arith.index_cast %arg0 : i32 to index
    %c0_19 = arith.constant 0 : index
    %c0_20 = arith.constant 0 : index
    %59 = vector.load %arg7[%58, %c0_19, %c0_20] : memref<2x8x128xbf16, #tpu.memory_space<vmem>>, vector<1x8x128xbf16>
    %60 = vector.shape_cast %59 : vector<1x8x128xbf16> to vector<8x128xbf16>
    %61 = vector.shape_cast %53 : vector<8x128xbf16> to vector<1x8x128xbf16>
    tpu.vector_store %arg7[%58, %c0_19, %c0_20], %61 {strides = array<i32>} : memref<2x8x128xbf16, #tpu.memory_space<vmem>>, vector<1x8x128xbf16>,
    %c0_21 = arith.constant 0 : index
    %c0_22 = arith.constant 0 : index
    %c0_23 = arith.constant 0 : index
    %62 = vector.load %arg6[%c0_21, %c0_22, %c0_23] : memref<1x8x128xbf16, #tpu.memory_space<vmem>>, vector<1x8x128xbf16>
    %63 = vector.shape_cast %62 : vector<1x8x128xbf16> to vector<8x128xbf16>
    %64 = vector.shape_cast %53 : vector<8x128xbf16> to vector<1x8x128xbf16>
    tpu.vector_store %arg6[%c0_21, %c0_22, %c0_23], %64 {strides = array<i32>} : memref<1x8x128xbf16, #tpu.memory_space<vmem>>, vector<1x8x128xbf16>,
    return
  }
  func.func @transform_0(%arg0: i32, %arg1: i32) -> (i32, i32, i32) {
    %c1_i32 = arith.constant 1 : i32
    %0 = arith.subi %c1_i32, %arg0 : i32
    %1 = arith.muli %0, %arg1 : i32
    %c3_i32 = arith.constant 3 : i32
    %2 = arith.subi %c3_i32, %arg1 : i32
    %3 = arith.muli %arg0, %2 : i32
    %4 = arith.addi %1, %3 : i32
    %c0_i32 = arith.constant 0 : i32
    %c0_i32_0 = arith.constant 0 : i32
    %c0_i32_1 = arith.constant 0 : i32
    return %4, %c0_i32, %c0_i32_0 : i32, i32, i32
  }
  func.func @transform_1(%arg0: i32, %arg1: i32) -> (i32, i32, i32) {
    %c0_i32 = arith.constant 0 : i32
    %c0_i32_0 = arith.constant 0 : i32
    %c0_i32_1 = arith.constant 0 : i32
    %c0_i32_2 = arith.constant 0 : i32
    return %c0_i32, %c0_i32_0, %c0_i32_1 : i32, i32, i32
  }
  func.func @transform_2(%arg0: i32, %arg1: i32) -> (i32, i32, i32) {
    %c0_i32 = arith.constant 0 : i32
    %c0_i32_0 = arith.constant 0 : i32
    %c0_i32_1 = arith.constant 0 : i32
    %c0_i32_2 = arith.constant 0 : i32
    return %c0_i32, %c0_i32_0, %c0_i32_1 : i32, i32, i32
  }
  func.func @transform_3(%arg0: i32, %arg1: i32) -> (i32, i32, i32) {
    %c0_i32 = arith.constant 0 : i32
    %c0_i32_0 = arith.constant 0 : i32
    %c0_i32_1 = arith.constant 0 : i32
    %c0_i32_2 = arith.constant 0 : i32
    return %c0_i32, %c0_i32_0, %c0_i32_1 : i32, i32, i32
  }
  func.func @transform_4(%arg0: i32, %arg1: i32) -> (i32, i32, i32) {
    %c1_i32 = arith.constant 1 : i32
    %0 = arith.subi %c1_i32, %arg0 : i32
    %1 = arith.muli %0, %arg1 : i32
    %c3_i32 = arith.constant 3 : i32
    %2 = arith.subi %c3_i32, %arg1 : i32
    %3 = arith.muli %arg0, %2 : i32
    %4 = arith.addi %1, %3 : i32
    %c0_i32 = arith.constant 0 : i32
    %c0_i32_0 = arith.constant 0 : i32
    return %4, %c0_i32, %arg0 : i32, i32, i32
  }
}

</mosaic_0001>

<bundles_post_ra>
// kernel: network_forward.3
= control target key start
LH: loop header
LB: loop body
LE: loop exit
PB: predicated region body
PF: predicated region fallthrough
CT: control target
= control target key end

     0   :  { %s469_s1 = inlined_call_operand.vmem [shape: bf16[256,128], index: 1, kind: input, shape index: {}]   ;;  %s470_s0 = inlined_call_operand.vmem [shape: bf16[32,256], index: 0, kind: input, shape index: {}]   ;;  %s471_s2 = inlined_call_operand.vmem [shape: f32[1,128], index: 2, kind: input, shape index: {}]   ;;  %s472_s3 = inlined_call_operand.vmem [shape: f32[32,128], index: 3, kind: output, shape index: {}]  }
   0x1   :  { %v336_v0 = vld [vmem:[%s469_s1 + $0x78] sm:$0xff]   ;;  %v338_v2 = vld [vmem:[%s469_s1 + $0x70] sm:$0xff]   ;;  %v340_v4 = vld [vmem:[%s469_s1 + $0x68] sm:$0xff]  }
   0x2   :  { %v337_v1 = vld [vmem:[%s469_s1 + $0x38] sm:$0xff]   ;;  %292 = vmatprep.subr.bf16.mxu0 %v336_v0  ;;  %320 = vmatprep.subr.bf16.mxu1 %v336_v0  ;;  %v339_v3 = vld [vmem:[%s469_s1 + $0x30] sm:$0xff]   ;;  %v341_v5 = vld [vmem:[%s469_s1 + $0x28] sm:$0xff]  }
   0x3   :  { %293 = vmatpush3.bf16.msra.mxu0 %v337_v1  ;;  %328 = vmatpush3.bf16.msra.mxu1 %v337_v1  ;;  %v342_v6 = vld [vmem:[%s469_s1 + $0x60] sm:$0xff]   ;;  %v344_v8 = vld [vmem:[%s469_s1 + $0x58] sm:$0xff]   ;;  %v346_v10 = vld [vmem:[%s469_s1 + $0x50] sm:$0xff]  }
   0x4   :  { %294 = vmatprep.subr.bf16.mxu0 %v338_v2  ;;  %321 = vmatprep.subr.bf16.mxu1 %v338_v2  ;;  %v343_v7 = vld [vmem:[%s469_s1 + $0x20] sm:$0xff]   ;;  %v345_v9 = vld [vmem:[%s469_s1 + $0x18] sm:$0xff]   ;;  %v347_v13 = vld [vmem:[%s469_s1 + $0x10] sm:$0xff]  }
   0x5   :  { %v354_v11 = vld [vmem:[%s470_s0 + $0x4] ss:$8 sps:$4 sm:$0xff]   ;;  %v357_v12 = vld [vmem:[%s470_s0 + $0x14] ss:$8 sps:$4 sm:$0xff]   ;;  %v352_v18 = vld [vmem:[%s470_s0] ss:$8 sps:$4 sm:$0xff]  }
   0x6   :  { %v348_v14 = vld [vmem:[%s469_s1 + $0x48] sm:$0xff]   ;;  %206 = vmatprep.mubr.bf16.mxu0 %v354_v11  ;;  %214 = vmatprep.mubr.bf16.mxu1 %v357_v12  ;;  %v350_v16 = vld [vmem:[%s469_s1 + $0x40] sm:$0xff]   ;;  %v355_v19 = vld [vmem:[%s470_s0 + $0x10] ss:$8 sps:$4 sm:$0xff]  }
   0x7   :  { %295 = vmatpush3.bf16.msra.mxu0 %v339_v3  ;;  %329 = vmatpush3.bf16.msra.mxu1 %v339_v3  ;;  %v349_v15 = vld [vmem:[%s469_s1 + $0x8] sm:$0xff]   ;;  %v351_v17 = vld [vmem:[%s469_s1] sm:$0xff]  }
   0x8   :  { %296 = vmatprep.subr.bf16.mxu0 %v340_v4  ;;  %322 = vmatprep.subr.bf16.mxu1 %v340_v4  ;;  %v271_v24 = vld [vmem:[%s471_s2] ss:$0 sm:$0xff] }
   0xb   :  { %297 = vmatpush3.bf16.msra.mxu0 %v341_v5  ;;  %330 = vmatpush3.bf16.msra.mxu1 %v341_v5 }
   0xc   :  { %298 = vmatprep.subr.bf16.mxu0 %v342_v6  ;;  %323 = vmatprep.subr.bf16.mxu1 %v342_v6 }
   0xf   :  { %299 = vmatpush3.bf16.msra.mxu0 %v343_v7  ;;  %331 = vmatpush3.bf16.msra.mxu1 %v343_v7 }
  0x10   :  { %300 = vmatprep.subr.bf16.mxu0 %v344_v8  ;;  %324 = vmatprep.subr.bf16.mxu1 %v344_v8 }
  0x13   :  { %301 = vmatpush3.bf16.msra.mxu0 %v345_v9  ;;  %332 = vmatpush3.bf16.msra.mxu1 %v345_v9 }
  0x14   :  { %302 = vmatprep.subr.bf16.mxu0 %v346_v10  ;;  %325 = vmatprep.subr.bf16.mxu1 %v346_v10 }
  0x17   :  { %303 = vmatpush3.bf16.msra.mxu0 %v347_v13  ;;  %333 = vmatpush3.bf16.msra.mxu1 %v347_v13 }
  0x18   :  { %304 = vmatprep.subr.bf16.mxu0 %v348_v14  ;;  %326 = vmatprep.subr.bf16.mxu1 %v348_v14 }
  0x1b   :  { %305 = vmatpush3.bf16.msra.mxu0 %v349_v15  ;;  %334 = vmatpush3.bf16.msra.mxu1 %v349_v15 }
  0x1c   :  { %306 = vmatprep.subr.bf16.mxu0 %v350_v16  ;;  %327 = vmatprep.subr.bf16.mxu1 %v350_v16 }
  0x1f   :  { %307 = vmatpush3.bf16.msra.mxu0 %v351_v17  ;;  %335 = vmatpush3.bf16.msra.mxu1 %v351_v17 }
  0x22   :  { %207 = vmatmul.mubr.bf16.vlgmr.msra.gmra.mxu0 %v352_v18  ;;  %215 = vmatmul.mubr.bf16.vlgmr.msra.gmra.mxu1 %v355_v19 }
  0xe2   :  { %v308_v20 = vpop.f32.mrf.mxu0  ;;  %v314_v21 = vpop.f32.mrf.mxu1 }
  0xe4   :  { %v309_v22 = vpop.f32.mrf.mxu0  ;;  %v315_v23 = vpop.f32.mrf.mxu1 }
  0xe5   :  { %v310_v25 = vadd.f32 %v309_v22, %v308_v20  ;;  %v316_v26 = vadd.f32 %v315_v23, %v314_v21 }
  0xe6   :  { %v311_v27 = vpop.f32.mrf.mxu0  ;;  %v317_v28 = vpop.f32.mrf.mxu1 }
  0xe7   :  { %v217_v29 = vadd.f32 %v316_v26, %v271_v24  ;;  %v209_v30 = vadd.f32 %v310_v25, %v271_v24 }
  0xe8   :  { %v312_v31 = vpop.f32.mrf.mxu0  ;;  %v318_v32 = vpop.f32.mrf.mxu1 }
  0xe9   :  { %v313_v33 = vadd.f32 %v312_v31, %v311_v27  ;;  %v319_v34 = vadd.f32 %v318_v32, %v317_v28  ;;  %227 = vmax.xlane.f32.xlu1 %v217_v29  ;;  %223 = vmax.xlane.f32.xlu0 %v209_v30 }
  0xeb   :  { %v220_v35 = vadd.f32 %v319_v34, %v271_v24  ;;  %v212_v36 = vadd.f32 %v313_v33, %v271_v24 }
  0xed   :  { %229 = vmax.xlane.f32.xlu1 %v220_v35  ;;  %225 = vmax.xlane.f32.xlu0 %v212_v36 }
 0x172   :  { %v228_v37 = vpop.xlane.xlu1 %227  ;;  %v224_v38 = vpop.xlane.xlu0 %223 }
 0x173   :  { %v233_v39 = vsub.f32 %v217_v29, %v228_v37  ;;  %v231_v40 = vsub.f32 %v209_v30, %v224_v38 }
 0x175   :  { %v235_v41 = vmul.f32 1.442695, %v231_v40  ;;  %v239_v44 = vmul.f32 1.442695, %v233_v39 }
 0x176   :  { %v230_v42 = vpop.xlane.xlu1 %229  ;;  %v226_v43 = vpop.xlane.xlu0 %225 }
 0x177   :  { %v232_v45 = vsub.f32 %v212_v36, %v226_v43  ;;  %358 = vpow2.f32 %v235_v41  ;;  %v234_v46 = vsub.f32 %v220_v35, %v230_v42 }
 0x178   :  { %360 = vpow2.f32 %v239_v44 }
 0x179   :  { %v237_v47 = vmul.f32 1.442695, %v232_v45  ;;  %v241_v48 = vmul.f32 1.442695, %v234_v46 }
 0x17b   :  { %362 = vpow2.f32 %v237_v47 }
 0x17c   :  { %364 = vpow2.f32 %v241_v48 }
 0x184   :  { %v359_v49 = vpop.eup %358 }
 0x185   :  { %243 = vadd.xlane.f32.xlu0 %v359_v49  ;;  %v361_v50 = vpop.eup %360 }
 0x188   :  { %v363_v51 = vpop.eup %362 }
 0x189   :  { %247 = vadd.xlane.f32.xlu0 %v361_v50  ;;  %245 = vadd.xlane.f32.xlu1 %v363_v51  ;;  %v365_v52 = vpop.eup %364 }
 0x18d   :  { %249 = vadd.xlane.f32.xlu1 %v365_v52 }
 0x20e   :  { %v244_v53 = vpop.xlane.xlu0 %243 }
 0x20f   :  { %366 = vlog2.f32 %v244_v53 }
 0x212   :  { %v246_v54 = vpop.xlane.xlu1 %245  ;;  %v248_v55 = vpop.xlane.xlu0 %247 }
 0x213   :  { %368 = vlog2.f32 %v246_v54 }
 0x214   :  { %370 = vlog2.f32 %v248_v55 }
 0x216   :  { %v250_v56 = vpop.xlane.xlu1 %249 }
 0x217   :  { %372 = vlog2.f32 %v250_v56 }
 0x21c   :  { %v367_v57 = vpop.eup %366 }
 0x21d   :  { %v252_v58 = vmul.f32 0.6931472, %v367_v57 }
 0x21f   :  { %v259_v59 = vsub.f32 %v231_v40, %v252_v58 }
 0x220   :  { %v369_v60 = vpop.eup %368 }
 0x221   :  { %v371_v61 = vpop.eup %370  ;;  %263 = vst [vmem:[%s472_s3] sm:$0xff] %v259_v59  ;;  %v254_v62 = vmul.f32 0.6931472, %v369_v60 }
 0x222   :  { %v256_v63 = vmul.f32 0.6931472, %v371_v61 }
 0x223   :  { %v260_v0 = vsub.f32 %v232_v45, %v254_v62 }
 0x224   :  { %v373_v1 = vpop.eup %372  ;;  %v261_v2 = vsub.f32 %v233_v39, %v256_v63 }
 0x225   :  { %264 = vst [vmem:[%s472_s3 + $0x8] sm:$0xff] %v260_v0  ;;  %v258_v3 = vmul.f32 0.6931472, %v373_v1 }
 0x226   :  { %265 = vst [vmem:[%s472_s3 + $0x10] sm:$0xff] %v261_v2 }
 0x227   :  { %v262_v4 = vsub.f32 %v234_v46, %v258_v3 }
 0x229   :  { %266 = vst [vmem:[%s472_s3 + $0x18] sm:$0xff] %v262_v4 }

// kernel: network_forward.2
= control target key start
LH: loop header
LB: loop body
LE: loop exit
PB: predicated region body
PF: predicated region fallthrough
CT: control target
= control target key end

     0   :  { %9 = vsyncpa [#allocation5], 0  ;;  %s1245_s15 = smov 0   ;;  %s1247_s16 = smov 0   ;;  %s1415_s0 = inlined_call_operand.vmem [shape: bf16[4,8,48], index: 0, kind: input, shape index: {}]   ;;  %s1416_s1 = inlined_call_operand.vmem [shape: bf16[2,48,512], index: 1, kind: input, shape index: {}]   ;;  %s1417_s2 = inlined_call_operand.hbm [shape: bf16[2,128,512], index: 2, kind: input, shape index: {}]   ;;  %s1418_s3 = inlined_call_operand.vmem [shape: f32[2,1,512], index: 3, kind: input, shape index: {}]   ;;  %s1419_s4 = inlined_call_operand.vmem [shape: bf16[4,8,256], index: 4, kind: output, shape index: {}]  }
   0x1   :  { %s1249_s17 = smov 0   ;;  %s1251_s18 = smov 0  }
   0x2   :  { %s1253_s19 = smov 0  }
   0x3 LB: > { %s934_s20 = sadd.s32 4294967295, %s1212_s19   ;;  %s24_s21 = sadd.s32 1, %s1204_s17  ;;  %s1212_s19 = sphi %s1253_s19, %s15_s19   ;;  %s1208_s18 = sphi %s1251_s18, %s1426_s18   ;;  %s1204_s17 = sphi %s1249_s17, %s1425_s17   ;;  %s1200_s16 = sphi %s1247_s16, %s1424_s16   ;;  %s1196_s15 = sphi %s1245_s15, %s1423_s15  }
   0x4   : > { %p25_p0 = scmp.ge.s32.totalorder %s24_s21, 4  ;;  %s27_s22 = sadd.s32 1, %s1208_s18 }
   0x5   : > { %p936_p1 = scmp.ge.s32.totalorder %s1212_s19, 1  ;;  %p169_p2 = scmp.lt.s32.totalorder %s1212_s19, 9 }
   0x6   : > { %s1428_s21 = smov (%p25_p0, %s24_s21), 0  ;;  %s1430_s22 = smov (!%p25_p0, %s27_s22), %s1208_s18 }
   0x7   : > { %p1278_p3 = pnand %p936_p1, %p169_p2  ;;  %p29_p4 = scmp.ge.s32.totalorder %s1430_s22, 2 }
   0x8   : > { %p1282_p5 = scmp.eq.s32.totalorder %s934_s20, 0  ;;  %s1214_s25 = smov [#allocation4]  }
   0x9   : > { %p1010_p6 = pneg %p1278_p3  ;;  %s1432_s22 = smov (%p29_p4, %s1430_s22), 0 }
   0xa   : > { %s184_s26 = sshll.u32 %s1214_s25, 4  ;;  %s185_s26 = int_to_ptr.vmem [resolvable:$true] %s184_s26 }
   0xb   : > { %p1292_p7 = pnand %p1282_p5, %p1010_p6  ;;  %s1155_s28 = scalar_lea.vmem %s185_s26, 8192 }
   0xc   : > { %p1156_p9 = scmp.ne.s32.totalorder %s185_s26, %s1155_s28  ;;  %p1163_p12 = scmp.lt.s32.totalorder %s185_s26, %s185_s26 }
   0xd   : > { %p1146_p8 = pneg %p1292_p7  ;;  %p1164_p13 = scmp.lt.s32.totalorder %s1155_s28, %s1155_s28 }
   0xf   : > { %p1158_p10 = pnand %p1156_p9, %p1146_p8  ;;  %p1165_p0 = por %p1164_p13, %p1163_p12 }
  0x11   : > { %p1159_p11 = pneg %p1158_p10 }
  0x13   : > { %p1166_p1 = pnand %p1165_p0, %p1159_p11 }
  0x15   : > { %1169 = shalt.err (!%p1166_p1)
}
  0x16   : > { %s1215_s29 = smov 256   ;;  %s1216_s30 = smov 16  }
  0x17   : > { %1013 = dma.hbm_to_vmem [thread:$0]  (!%p1292_p7), %s1417_s2, 8192, %s185_s26, [#allocation5], %s1215_s29, %s1215_s29, %s1216_s30  }
  0x18   : > { %220 = sbr.rel (%p1278_p3) target bundleno = 354 (0x162), region = 36 }
  0x1d   : > { %1191 = dma.done.wait (%p1282_p5), [#allocation5], 8192  }
  0x1e   : > { %1193 = vsyncadd (%p1282_p5), [#allocation5], 4294959104  ;;  %s258_s7 = ssub.s32 1, %s1200_s16  ;;  %s260_s8 = ssub.s32 3, %s1196_s15 }
  0x1f   : > { %s259_s9 = smul.u32 %s1196_s15, %s258_s7  ;;  %p279_p2 = scmp.lt.s32.totalorder %s1200_s16, 1 }
  0x20   : > { %s261_s10 = smul.u32 %s1200_s16, %s260_s8  ;;  %p944_p3 = scmp.ne.s32.totalorder %s1196_s15, 0 }
  0x21   : > { %s280_s12 = scalar_select %p279_p2, %s1200_s16, 1 }
  0x22   : > { %s262_s11 = sadd.s32 %s261_s10, %s259_s9  ;;  %s945_s30 = sshll.u32 (!%p944_p3), %s1200_s16, 2 }
  0x23   : > { %p263_p4 = scmp.lt.s32.totalorder %s262_s11, 3  ;;  %s946_s5 = sshll.u32 (!%p944_p3), %s1200_s16, 3 }
  0x24   : > { %s297_s6 = scalar_lea.vmem (!%p944_p3), [#allocation2], %s945_s30  ;;  %s300_s7 = scalar_lea.vmem (!%p944_p3), [#allocation3], %s946_s5 }
  0x25   : > { %s1434_s11 = smov (!%p263_p4, %s262_s11), 3  ;;  %295 = sbr.rel (%p944_p3) target bundleno = 44 (0x2c), region = 44 }
  0x26   : > { %s941_s13 = sshll.u32 %s1434_s11, 2  ;;  %s942_s14 = sshll.u32 %s1434_s11, 1 }
  0x27   : > { %s1318_s24 = scalar_lea.vmem %s1415_s0, %s941_s13  ;;  %s282_s25 = sadd.s32 %s942_s14, %s280_s12 }
  0x28   : > { %s943_s26 = sshll.u32 %s282_s25, 2 }
  0x29   : > { %s1323_s29 = scalar_lea.vmem %s1419_s4, %s943_s26 }
  0x2a   : > { %v1217_v0 = vmov 0   ;;  %v1218_v1 = vmov 0.0  }
  0x2b   : > { %298 = vst [vmem:[%s297_s6] sm:$0xf] %v1217_v0  ;;  %301 = vst [vmem:[%s300_s7] sm:$0xff] %v1218_v1 }
  0x2c PF: > { %s1005_s8 = sshll.u32 %s1200_s16, 8  ;;  %v1219_v2 = vmov 0   ;;  %s1004_s9 = smul.u32 96, %s1200_s16  ;;  %v302_v47 = vld [vmem:[%s1318_s24] sm:$0xf]  ;;  %vm658_vm0 = vcmask 392192   ;;  %v748_v49 = vlaneseq }
  0x2d   : > { %548 = vmatprep.mubr.bf16.mxu0 %v1219_v2  ;;  %589 = vmatprep.mubr.bf16.mxu1 %v1219_v2  ;;  %s1331_s15 = scalar_lea.vmem [#allocation4], %s1005_s8  ;;  %s948_s13 = sshll.u32 %s1200_s16, 2 }
  0x2e   : > { %v1062_v3 = vld [vmem:[%s1331_s15 + $0xe4] ss:$16 sps:$4 sm:$0xff]   ;;  %v1064_v4 = vld [vmem:[%s1331_s15 + $0xe0] ss:$16 sps:$4 sm:$0xff]   ;;  %v1071_v8 = vld [vmem:[%s1331_s15 + $0xec] ss:$16 sps:$4 sm:$0xff]   ;;  %s1358_s12 = scalar_lea.vmem %s1416_s1, %s1004_s9  ;;  %s745_s25 = scalar_lea.vmem %s1418_s3, %s948_s13 }
  0x2f   : > { %516 = vmatprep.subr.bf16.mxu0 %v1062_v3  ;;  %v1065_v5 = vld [vmem:[%s1331_s15 + $0xc4] ss:$16 sps:$4 sm:$0xff]   ;;  %v1067_v6 = vld [vmem:[%s1331_s15 + $0xc0] ss:$16 sps:$4 sm:$0xff]   ;;  %v1073_v9 = vld [vmem:[%s1331_s15 + $0xe8] ss:$16 sps:$4 sm:$0xff]   ;;  %557 = vmatprep.subr.bf16.mxu1 %v1071_v8 }
  0x30   : > { %517 = vmatpush1.bf16.msra.mxu0 %v1064_v4  ;;  %v1068_v7 = vld [vmem:[%s1331_s15 + $0xa4] ss:$16 sps:$4 sm:$0xff]   ;;  %v1070_v10 = vld [vmem:[%s1331_s15 + $0xa0] ss:$16 sps:$4 sm:$0xff]   ;;  %558 = vmatpush1.bf16.msra.mxu1 %v1073_v9  ;;  %v1077_v11 = vld [vmem:[%s1331_s15 + $0xcc] ss:$16 sps:$4 sm:$0xff]  }
  0x31   : > { %518 = vmatprep.subr.bf16.mxu0 %v1065_v5  ;;  %v1079_v12 = vld [vmem:[%s1331_s15 + $0xc8] ss:$16 sps:$4 sm:$0xff]   ;;  %v1074_v13 = vld [vmem:[%s1331_s15 + $0x84] ss:$16 sps:$4 sm:$0xff]   ;;  %559 = vmatprep.subr.bf16.mxu1 %v1077_v11  ;;  %v1076_v14 = vld [vmem:[%s1331_s15 + $0x80] ss:$16 sps:$4 sm:$0xff]  }
  0x32   : > { %v1083_v15 = vld [vmem:[%s1331_s15 + $0xac] ss:$16 sps:$4 sm:$0xff]   ;;  %v1080_v16 = vld [vmem:[%s1331_s15 + $0x64] ss:$16 sps:$4 sm:$0xff]   ;;  %v1085_v17 = vld [vmem:[%s1331_s15 + $0xa8] ss:$16 sps:$4 sm:$0xff]  }
  0x33   : > { %v1089_v18 = vld [vmem:[%s1331_s15 + $0x8c] ss:$16 sps:$4 sm:$0xff]   ;;  %v1082_v19 = vld [vmem:[%s1331_s15 + $0x60] ss:$16 sps:$4 sm:$0xff]   ;;  %v1086_v20 = vld [vmem:[%s1331_s15 + $0x44] ss:$16 sps:$4 sm:$0xff]  }
  0x34   : > { %519 = vmatpush1.bf16.msra.mxu0 %v1067_v6  ;;  %560 = vmatpush1.bf16.msra.mxu1 %v1079_v12  ;;  %v1091_v21 = vld [vmem:[%s1331_s15 + $0x88] ss:$16 sps:$4 sm:$0xff]   ;;  %v1095_v22 = vld [vmem:[%s1331_s15 + $0x6c] ss:$16 sps:$4 sm:$0xff]   ;;  %v1088_v23 = vld [vmem:[%s1331_s15 + $0x40] ss:$16 sps:$4 sm:$0xff]  }
  0x35   : > { %520 = vmatprep.subr.bf16.mxu0 %v1068_v7  ;;  %561 = vmatprep.subr.bf16.mxu1 %v1083_v15  ;;  %v1097_v24 = vld [vmem:[%s1331_s15 + $0x68] ss:$16 sps:$4 sm:$0xff]   ;;  %v1092_v25 = vld [vmem:[%s1331_s15 + $0x24] ss:$16 sps:$4 sm:$0xff]   ;;  %v1101_v26 = vld [vmem:[%s1331_s15 + $0x4c] ss:$16 sps:$4 sm:$0xff]  }
  0x36   : > { %v1094_v27 = vld [vmem:[%s1331_s15 + $0x20] ss:$16 sps:$4 sm:$0xff]   ;;  %v1103_v28 = vld [vmem:[%s1331_s15 + $0x48] ss:$16 sps:$4 sm:$0xff]   ;;  %v1098_v29 = vld [vmem:[%s1331_s15 + $0x4] ss:$16 sps:$4 sm:$0xff]  }
  0x37   : > { %v1107_v30 = vld [vmem:[%s1331_s15 + $0x2c] ss:$16 sps:$4 sm:$0xff]   ;;  %v1100_v31 = vld [vmem:[%s1331_s15] ss:$16 sps:$4 sm:$0xff]   ;;  %v1109_v32 = vld [vmem:[%s1331_s15 + $0x28] ss:$16 sps:$4 sm:$0xff]  }
  0x38   : > { %521 = vmatpush1.bf16.msra.mxu0 %v1070_v10  ;;  %562 = vmatpush1.bf16.msra.mxu1 %v1085_v17  ;;  %v1106_v33 = vld [vmem:[%s1358_s12 + $0x44] ss:$16 sps:$4 sm:$0xff]   ;;  %v1113_v34 = vld [vmem:[%s1331_s15 + $0xc] ss:$16 sps:$4 sm:$0xff]   ;;  %s1374_s14 = scalar_lea.vmem [#allocation2], %s948_s13  ;;  %v749_v52 = vshrl.u32 %v748_v49, 7 }
  0x39   : > { %522 = vmatprep.subr.bf16.mxu0 %v1074_v13  ;;  %563 = vmatprep.subr.bf16.mxu1 %v1089_v18  ;;  %v320_v35 = vld [vmem:[%s1374_s14] sm:$0xf]  ;;  %v1115_v37 = vld [vmem:[%s1331_s15 + $0x8] ss:$16 sps:$4 sm:$0xff]   ;;  %v1112_v38 = vld [vmem:[%s1358_s12 + $0x24] ss:$16 sps:$4 sm:$0xff]  }
  0x3a   : > { %v1104_v36 = vld [vmem:[%s1358_s12 + $0x40] ss:$16 sps:$4 sm:$0xff]   ;;  %v1121_v39 = vld [vmem:[%s1358_s12 + $0x4c] ss:$16 sps:$4 sm:$0xff]   ;;  %v1119_v41 = vld [vmem:[%s1358_s12 + $0x48] ss:$16 sps:$4 sm:$0xff]  }
  0x3b   : > { %v1110_v40 = vld [vmem:[%s1358_s12 + $0x20] ss:$16 sps:$4 sm:$0xff]   ;;  %v1118_v42 = vld [vmem:[%s1358_s12 + $0x4] ss:$16 sps:$4 sm:$0xff]   ;;  %v1124_v43 = vld [vmem:[%s1358_s12 + $0x2c] ss:$16 sps:$4 sm:$0xff]  }
  0x3c   : > { %523 = vmatpush1.bf16.msra.mxu0 %v1076_v14  ;;  %564 = vmatpush1.bf16.msra.mxu1 %v1091_v21  ;;  %v1116_v44 = vld [vmem:[%s1358_s12] ss:$16 sps:$4 sm:$0xff]   ;;  %v1122_v45 = vld [vmem:[%s1358_s12 + $0x28] ss:$16 sps:$4 sm:$0xff]   ;;  %v1127_v46 = vld [vmem:[%s1358_s12 + $0xc] ss:$16 sps:$4 sm:$0xff]  }
  0x3d   : > { %524 = vmatprep.subr.bf16.mxu0 %v1080_v16  ;;  %565 = vmatprep.subr.bf16.mxu1 %v1095_v22  ;;  %v1125_v48 = vld [vmem:[%s1358_s12 + $0x8] ss:$16 sps:$4 sm:$0xff]   ;;  %v750_v57 = vsub.s32 0, %v749_v52  ;;  %v746_v58 = vld [vmem:[%s745_s25] sm:$0xf]  ;;  %v754_v60 = vsub.s32 1, %v749_v52 }
  0x3e   : > { %v762_v13 = vsub.s32 3, %v749_v52  ;;  %v758_v16 = vsub.s32 2, %v749_v52  ;;  %s1001_s24 = sshll.u32 %s1200_s16, 3 }
  0x3f   : > { %v751_v62 = vrot.slane %v746_v58, %v750_v57  ;;  %v755_v1 = vrot.slane %v746_v58, %v754_v60  ;;  %s799_s26 = scalar_lea.vmem [#allocation3], %s1001_s24 }
  0x40   : > { %525 = vmatpush1.bf16.msra.mxu0 %v1082_v19  ;;  %566 = vmatpush1.bf16.msra.mxu1 %v1097_v24  ;;  %v763_v19 = vrot.slane %v746_v58, %v762_v13  ;;  %v759_v21 = vrot.slane %v746_v58, %v758_v16 }
  0x41   : > { %526 = vmatprep.subr.bf16.mxu0 %v1086_v20  ;;  %567 = vmatprep.subr.bf16.mxu1 %v1101_v26 }
  0x44   : > { %527 = vmatpush1.bf16.msra.mxu0 %v1088_v23  ;;  %568 = vmatpush1.bf16.msra.mxu1 %v1103_v28 }
  0x45   : > { %528 = vmatprep.subr.bf16.mxu0 %v1092_v25  ;;  %569 = vmatprep.subr.bf16.mxu1 %v1107_v30 }
  0x48   : > { %529 = vmatpush1.bf16.msra.mxu0 %v1094_v27  ;;  %570 = vmatpush1.bf16.msra.mxu1 %v1109_v32 }
  0x49   : > { %530 = vmatprep.subr.bf16.mxu0 %v1098_v29  ;;  %571 = vmatprep.subr.bf16.mxu1 %v1113_v34 }
  0x4c   : > { %531 = vmatpush1.bf16.msra.mxu0 %v1100_v31  ;;  %572 = vmatpush1.bf16.msra.mxu1 %v1115_v37 }
  0x4d   : > { %672 = vmatprep.subr.bf16.mxu0 %v1106_v33  ;;  %713 = vmatprep.subr.bf16.mxu1 %v1121_v39 }
  0x4f   : > { %549 = vmatmul.mubr.bf16.vlgmr.msra.gmra.mxu0 %v320_v35  ;;  %590 = vmatmul.mubr.bf16.vlgmr.msra.gmra.mxu1 %v320_v35 }
  0x50   : > { %673 = vmatpush1.bf16.msra.mxu0 %v1104_v36  ;;  %694 = vmatprep.mubr.bf16.mxu0 %v1219_v2 }
  0x51   : > { %674 = vmatprep.subr.bf16.mxu0 %v1112_v38  ;;  %714 = vmatpush1.bf16.msra.mxu1 %v1119_v41  ;;  %v800_v38 = vld [vmem:[%s799_s26] sm:$0xff] }
  0x52   : > { %715 = vmatprep.subr.bf16.mxu1 %v1124_v43  ;;  %735 = vmatprep.mubr.bf16.mxu1 %v1219_v2 }
  0x54   : > { %675 = vmatpush1.bf16.msra.mxu0 %v1110_v40 }
  0x55   : > { %676 = vmatprep.subr.bf16.mxu0 %v1118_v42  ;;  %716 = vmatpush1.bf16.msra.mxu1 %v1122_v45 }
  0x56   : > { %717 = vmatprep.subr.bf16.mxu1 %v1127_v46 }
  0x58   : > { %677 = vmatpush1.bf16.msra.mxu0 %v1116_v44 }
  0x59   : > { %718 = vmatpush1.bf16.msra.mxu1 %v1125_v48 }
  0x5b   : > { %995 = vmatmul.mubr.msk.bf16.vlgmr.msra.gmra.mxu0 %vm658_vm0, %v302_v47 }
  0x5c   : > { %996 = vmatmul.mubr.msk.bf16.vlgmr.msra.gmra.mxu1 %vm658_vm0, %v302_v47 }
 0x10f   : > { %v550_v50 = vpop.f32.mrf.mxu0  ;;  %v591_v54 = vpop.f32.mrf.mxu1 }
 0x111   : > { %v552_v51 = vpop.f32.mrf.mxu0  ;;  %v593_v56 = vpop.f32.mrf.mxu1 }
 0x113   : > { %v554_v53 = vpop.f32.mrf.mxu0  ;;  %v595_v59 = vpop.f32.mrf.mxu1 }
 0x115   : > { %v555_v55 = vpop.f32.mrf.mxu0  ;;  %v596_v61 = vpop.f32.mrf.mxu1 }
 0x11b   : > { %v696_v63 = vpop.f32.mrf.mxu0 }
 0x11c   : > { %v697_v0 = vadd.f32 %v696_v63, %v550_v50  ;;  %v737_v6 = vpop.f32.mrf.mxu1 }
 0x11d   : > { %v698_v2 = vpop.f32.mrf.mxu0  ;;  %v738_v20 = vadd.f32 %v737_v6, %v591_v54 }
 0x11e   : > { %v768_v3 = vadd.f32 %v751_v62, %v697_v0  ;;  %v699_v4 = vadd.f32 %v698_v2, %v552_v51  ;;  %v739_v10 = vpop.f32.mrf.mxu1 }
 0x11f   : > { %v700_v5 = vpop.f32.mrf.mxu0  ;;  %v740_v18 = vadd.f32 %v739_v10, %v593_v56  ;;  %v770_v23 = vadd.f32 %v759_v21, %v738_v20 }
 0x120   : > { %v772_v7 = vpack.c.bf16 %v768_v3, %v768_v3  ;;  %v769_v8 = vadd.f32 %v755_v1, %v699_v4  ;;  %v741_v14 = vpop.f32.mrf.mxu1 }
 0x121   : > { %v701_v9 = vpop.f32.mrf.mxu0  ;;  %v771_v22 = vadd.f32 %v763_v19, %v740_v18  ;;  %v774_v25 = vpack.c.bf16 %v770_v23, %v770_v23 }
 0x122   : > { %v998_v11 = vmul.bf16 3216621497, %v772_v7  ;;  %v773_v12 = vpack.c.bf16 %v769_v8, %v769_v8  ;;  %v742_v17 = vpop.f32.mrf.mxu1 }
 0x123   : > { %v775_v24 = vpack.c.bf16 %v771_v22, %v771_v22 }
 0x124   : > { %1128 = vpow.bf16 %v998_v11  ;;  %v999_v15 = vmul.bf16 3216621497, %v773_v12 }
 0x125   : > { %v1000_v27 = vmul.bf16 3216621497, %v775_v24 }
 0x126   : > { %1130 = vpow.bf16 %v999_v15 }
 0x127   : > { %1132 = vtanh.bf16 %v774_v25 }
 0x132   : > { %v1129_v26 = vpop.eup %1128 }
 0x133   : > { %v780_v28 = vadd.bf16 1065369472, %v1129_v26 }
 0x134   : > { %v1131_v29 = vpop.eup %1130 }
 0x135   : > { %1134 = vrcp.bf16 %v780_v28  ;;  %v787_v30 = vadd.bf16 1065369472, %v1131_v29  ;;  %v1133_v31 = vpop.eup %1132 }
 0x136   : > { %1136 = vpow.bf16 %v1000_v27 }
 0x137   : > { %1138 = vrcp.bf16 %v787_v30 }
 0x143   : > { %v1135_v32 = vpop.eup %1134 }
 0x144   : > { %v1137_v33 = vpop.eup %1136  ;;  %v782_v34 = vmul.bf16 1065369472, %v1135_v32 }
 0x145   : > { %v1139_v35 = vpop.eup %1138  ;;  %v795_v40 = vadd.bf16 1065369472, %v1137_v33 }
 0x146   : > { %v789_v36 = vmul.bf16 1065369472, %v1139_v35  ;;  %v803_v37 = vmul.bf16 %v1133_v31, %v782_v34 }
 0x147   : > { %1140 = vrcp.bf16 %v795_v40 }
 0x148   : > { %v801_v39 = vunpack.c.l.bf16 %v789_v36  ;;  %v804_v42 = vunpack.c.l.bf16 %v803_v37 }
 0x14a   : > { %v802_v41 = vmul.f32 %v801_v39, %v800_v38 }
 0x14c   : > { %v805_v43 = vadd.f32 %v804_v42, %v802_v41 }
 0x14e   : > { %v806_v44 = vpack.c.bf16 %v805_v43, %v805_v43  ;;  %809 = vst [vmem:[%s799_s26] sm:$0xff] %v805_v43 }
 0x150   : > { %1142 = vtanh.bf16 %v806_v44 }
 0x155   : > { %v1141_v45 = vpop.eup %1140 }
 0x156   : > { %v797_v46 = vmul.bf16 1065369472, %v1141_v45 }
 0x15e   : > { %v1143_v47 = vpop.eup %1142 }
 0x15f   : > { %v808_v48 = vmul.bf16 %v1143_v47, %v797_v46 }
 0x161   : > { %810 = vst [vmem:[%s1374_s14] sm:$0xf] %v808_v48  ;;  %811 = vst [vmem:[%s1323_s29] sm:$0xf] %v808_v48 }
 0x162 PF: > { %s15_s19 = sadd.s32 1, %s1212_s19   ;;  %s1423_s15 = smov %s1204_s17 }
 0x163   : > { %p12_p5 = scmp.ge.s32.totalorder %s15_s19, 10   ;;  %s1424_s16 = smov %s1208_s18 }
 0x164   : > { %s1425_s17 = smov %s1428_s21  ;;  %s1426_s18 = smov %s1432_s22 }
 0x165   :  { %14 = sbr.rel (!%p12_p5) target bundleno = 3 (0x3), region = 82 }
 0x16a   :  { %854 = vsyncpa [#allocation5], 1 }
 0x16b   :  { %856 = vsyncpa [#allocation5 + $0x1], 1 }

</bundles_post_ra>
